<compile_context>
chip_gen: v7x
topology: tpu7x:2x2x1
jax: 0.10.0
libtpu: 0.0.40
codegen_flags: <defaults>
</compile_context>

<pallas_src>
import functools

import jax
import jax.numpy as jnp
from jax.experimental import pallas as pl
from jax.experimental.pallas import tpu as pltpu

EPS = 1e-5


def bn_kernel(x_ref, gamma_ref, beta_ref, o_ref, *, n, c, hw_valid):
    # x_ref: (n*c, hw_pad); row i holds batch b = i // c, channel ch = i % c.
    # Columns >= hw_valid (if any) are zero padding (contribute 0 to sums).
    x = x_ref[...].astype(jnp.float32)                  # (nc, hw_pad)
    nc, hw_pad = x.shape
    inv_m = 1.0 / (n * hw_valid)                        # per-channel count

    if hw_pad >= 1024:
        # Large spatial: push the per-row reductions onto the otherwise idle
        # MXU with a single dot on the stacked [x; x*x].
        stacked = jnp.concatenate([x, x * x], axis=0)   # (2*nc, hw_pad)
        ones = jnp.ones((hw_pad, 1), jnp.float32)
        red = jnp.dot(stacked, ones, preferred_element_type=jnp.float32)
        s, ss = red[:nc, :], red[nc:, :]                # (nc, 1) each
    else:
        # Small spatial (this workload): lane reductions on the VPU/XLU.
        s = jnp.sum(x, axis=1, keepdims=True)           # (nc, 1)
        ss = jnp.sum(x * x, axis=1, keepdims=True)      # (nc, 1)

    # Pack (sum, sumsq) side by side so a SINGLE roll+add chain combines the
    # n rows of each channel (rows of a channel are spaced by c sublanes; the
    # cyclic wrap leaves every row holding its channel's totals, already
    # broadcast over the batch dimension).
    tot = jnp.concatenate([s, ss], axis=1)              # (nc, 2)
    if n & (n - 1) == 0:
        shift = c                                       # log2(n) doubling tree
        while shift < n * c:
            tot = tot + pltpu.roll(tot, shift=shift, axis=0)
            shift *= 2
    else:
        base = tot                                      # general-n fallback
        for k in range(1, n):
            tot = tot + pltpu.roll(base, shift=k * c, axis=0)

    mean = tot[:, 0:1] * inv_m                          # per-channel mean of x
    var = jnp.maximum(tot[:, 1:2] * inv_m - mean * mean, 0.0)

    # BN(2x): (2x - 2*mean) * rsqrt(4*var + eps) * gamma + beta  ==  x*a + b
    inv = jax.lax.rsqrt(4.0 * var + EPS)                # EUP
    a = 2.0 * gamma_ref[...] * inv                      # (nc, 1)
    b = beta_ref[...] - mean * a                        # (nc, 1)

    o_ref[...] = (x * a + b).astype(o_ref.dtype)


def _bn_model_forward_impl(x_nchw, gamma, beta):
    """x_nchw: (N, C, H, W). Returns training-mode BatchNorm2d of 2*x."""
    n, c, h, w = x_nchw.shape
    nc, hw = n * c, h * w
    hw_pad = ((hw + 127) // 128) * 128                  # keep lanes dense

    x_flat = x_nchw.reshape(nc, hw)                     # free row-major view
    if hw_pad != hw:
        x_flat = jnp.pad(x_flat, ((0, 0), (0, hw_pad - hw)))

    # Per-row (batch, channel) gamma/beta; fuses into this jit dispatch.
    gamma_nc = jnp.tile(gamma.astype(jnp.float32), n).reshape(nc, 1)
    beta_nc = jnp.tile(beta.astype(jnp.float32), n).reshape(nc, 1)

    # Scoped VMEM sized from the operands (input + output + params + slack),
    # so larger-but-still-resident shapes keep the gridless fast path.
    x_bytes = nc * hw_pad * x_flat.dtype.itemsize
    vmem_limit = int(min(48 << 20, max(3 * x_bytes + (1 << 20), 8 << 20)))

    # TODO(synk): for v7x-scale workloads add an NC-axis "parallel" grid (block
    # rows a multiple of c) to use both TensorCores + an HW reduction grid if
    # activations exceed the 64 MiB VMEM; unnecessary at this size.
    out_flat = pl.pallas_call(
        functools.partial(bn_kernel, n=n, c=c, hw_valid=hw),
        out_shape=jax.ShapeDtypeStruct((nc, hw_pad), x_flat.dtype),
        # No grid: single invocation, whole (tiny) operands resident in VMEM,
        # no per-step pipeline setup/teardown overhead.
        in_specs=[
            pl.BlockSpec(memory_space=pltpu.MemorySpace.VMEM),
            pl.BlockSpec(memory_space=pltpu.MemorySpace.VMEM),
            pl.BlockSpec(memory_space=pltpu.MemorySpace.VMEM),
        ],
        out_specs=pl.BlockSpec(memory_space=pltpu.MemorySpace.VMEM),
        compiler_params=pltpu.CompilerParams(vmem_limit_bytes=vmem_limit),
    )(x_flat, gamma_nc, beta_nc)

    if hw_pad != hw:
        out_flat = out_flat[:, :hw]
    return out_flat.reshape(n, c, h, w)                 # free view back to NCHW


# jit so the param-tiling glue + reshapes const-fold/fuse into one dispatch.
bn_model_forward = jax.jit(_bn_model_forward_impl)


def reference_forward(x_nchw, gamma, beta):
    x = x_nchw * 2.0
    mean = jnp.mean(x, axis=(0, 2, 3), keepdims=True)
    var = jnp.mean((x - mean) ** 2, axis=(0, 2, 3), keepdims=True)
    return (x - mean) / jnp.sqrt(var + EPS) * gamma[None, :, None, None] \
        + beta[None, :, None, None]


if __name__ == "__main__":
    key = jax.random.PRNGKey(0)
    N, C, H, W = 2, 4, 16, 16
    x = jax.random.normal(key, (N, C, H, W), dtype=jnp.float32)

    # nn.BatchNorm2d defaults: weight (gamma) = 1, bias (beta) = 0.
    gamma = jnp.ones((C,), dtype=jnp.float32)
    beta = jnp.zeros((C,), dtype=jnp.float32)

    out = bn_model_forward(x, gamma, beta)
    out = jax.block_until_ready(out)

    ref = reference_forward(x, gamma, beta)
    assert out.shape == (N, C, H, W)
    assert jnp.allclose(out, ref, atol=1e-4, rtol=1e-4)
    # TODO(synk): running_mean/running_var buffer updates (training-mode side
    # effect of nn.BatchNorm2d) are not modeled; they do not affect the output.
    print("KERNEL_OK")
</pallas_src>

<mosaic_0001>
module attributes {stable_mosaic.version = 11 : i64} {
  func.func @bn_kernel(%arg0: memref<8x256xf32, #tpu.memory_space<vmem>>, %arg1: memref<8x1xf32, #tpu.memory_space<vmem>>, %arg2: memref<8x1xf32, #tpu.memory_space<vmem>>, %arg3: memref<8x256xf32, #tpu.memory_space<vmem>>) attributes {dimension_semantics = [], scalar_prefetch = 0 : i64, scratch_operands = 0 : i64, tpu.core_type = #tpu.core_type<tc>} {
    %c0 = arith.constant 0 : index
    %c0_0 = arith.constant 0 : index
    %0 = vector.load %arg0[%c0, %c0_0] : memref<8x256xf32, #tpu.memory_space<vmem>>, vector<8x256xf32>
    %cst = arith.constant dense<0.000000e+00> : vector<8xf32>
    %1 = vector.multi_reduction <add>, %0, %cst [1] : vector<8x256xf32> to vector<8xf32>
    %2 = vector.shape_cast %1 : vector<8xf32> to vector<8x1xf32>
    %3 = arith.mulf %0, %0 : vector<8x256xf32>
    %cst_1 = arith.constant dense<0.000000e+00> : vector<8xf32>
    %4 = vector.multi_reduction <add>, %3, %cst_1 [1] : vector<8x256xf32> to vector<8xf32>
    %5 = vector.shape_cast %4 : vector<8xf32> to vector<8x1xf32>
    %6 = tpu.concatenate %2, %5 in 1 : vector<8x1xf32>, vector<8x1xf32> -> vector<8x2xf32>
    %c4_i32 = arith.constant 4 : i32
    %7 = tpu.dynamic_rotate %6 by %c4_i32 dim 0 : vector<8x2xf32>, i32 -> vector<8x2xf32>
    %8 = arith.addf %6, %7 : vector<8x2xf32>
    %9 = vector.extract_strided_slice %8 {offsets = [0, 0], sizes = [8, 1], strides = [1, 1]} : vector<8x2xf32> to vector<8x1xf32>
    %cst_2 = arith.constant 0.001953125 : f32
    %10 = vector.broadcast %cst_2 : f32 to vector<8x1xf32>
    %11 = arith.mulf %9, %10 : vector<8x1xf32>
    %12 = vector.extract_strided_slice %8 {offsets = [0, 1], sizes = [8, 1], strides = [1, 1]} : vector<8x2xf32> to vector<8x1xf32>
    %cst_3 = arith.constant 0.001953125 : f32
    %13 = vector.broadcast %cst_3 : f32 to vector<8x1xf32>
    %14 = arith.mulf %12, %13 : vector<8x1xf32>
    %15 = arith.mulf %11, %11 : vector<8x1xf32>
    %16 = arith.subf %14, %15 : vector<8x1xf32>
    %cst_4 = arith.constant 0.000000e+00 : f32
    %17 = vector.broadcast %cst_4 : f32 to vector<8x1xf32>
    %18 = arith.maximumf %16, %17 : vector<8x1xf32>
    %cst_5 = arith.constant 4.000000e+00 : f32
    %19 = vector.broadcast %cst_5 : f32 to vector<8x1xf32>
    %20 = arith.mulf %19, %18 : vector<8x1xf32>
    %cst_6 = arith.constant 9.99999974E-6 : f32
    %21 = vector.broadcast %cst_6 : f32 to vector<8x1xf32>
    %22 = arith.addf %20, %21 : vector<8x1xf32>
    %23 = math.rsqrt %22 : vector<8x1xf32>
    %c0_7 = arith.constant 0 : index
    %c0_8 = arith.constant 0 : index
    %24 = vector.load %arg1[%c0_7, %c0_8] : memref<8x1xf32, #tpu.memory_space<vmem>>, vector<8x1xf32>
    %cst_9 = arith.constant 2.000000e+00 : f32
    %25 = vector.broadcast %cst_9 : f32 to vector<8x1xf32>
    %26 = arith.mulf %25, %24 : vector<8x1xf32>
    %27 = arith.mulf %26, %23 : vector<8x1xf32>
    %c0_10 = arith.constant 0 : index
    %c0_11 = arith.constant 0 : index
    %28 = vector.load %arg2[%c0_10, %c0_11] : memref<8x1xf32, #tpu.memory_space<vmem>>, vector<8x1xf32>
    %29 = arith.mulf %11, %27 : vector<8x1xf32>
    %30 = arith.subf %28, %29 : vector<8x1xf32>
    %31 = vector.broadcast %27 : vector<8x1xf32> to vector<8x256xf32>
    %32 = arith.mulf %0, %31 : vector<8x256xf32>
    %33 = vector.broadcast %30 : vector<8x1xf32> to vector<8x256xf32>
    %34 = arith.addf %32, %33 : vector<8x256xf32>
    %c0_12 = arith.constant 0 : index
    %c0_13 = arith.constant 0 : index
    %35 = vector.load %arg3[%c0_12, %c0_13] : memref<8x256xf32, #tpu.memory_space<vmem>>, vector<8x256xf32>
    tpu.vector_store %arg3[%c0_12, %c0_13], %34 {strides = array<i32>} : memref<8x256xf32, #tpu.memory_space<vmem>>, vector<8x256xf32>,
    return
  }
}

</mosaic_0001>

<bundles_post_ra>
// kernel: tile.13
= control target key start
LH: loop header
LB: loop body
LE: loop exit
PB: predicated region body
PF: predicated region fallthrough
CT: control target
= control target key end

     0   :  { %s22_s0 = inlined_call_operand.vmem [shape: f32[4], index: 0, kind: input, shape index: {}]   ;;  %s23_s1 = inlined_call_operand.vmem [shape: f32[2,4], index: 1, kind: output, shape index: {}]  }
   0x1   :  { %v4_v0 = vld [vmem:[%s22_s0] ss:$0 sm:$0xff] }
   0x2   :  { %5 = vst [vmem:[%s23_s1] sm:$0x3] %v4_v0 }

// kernel: tile.1
= control target key start
LH: loop header
LB: loop body
LE: loop exit
PB: predicated region body
PF: predicated region fallthrough
CT: control target
= control target key end

     0   :  { %s34_s8 = smov 125   ;;  %vm7_vm0 = vcmask 7168   ;;  %s35_s11 = smov 126   ;;  %s61_s0 = inlined_call_operand.vmem [shape: f32[2,4], index: 0, kind: input, shape index: {}]   ;;  %s62_s1 = inlined_call_operand.vmem [shape: f32[8,1], index: 1, kind: output, shape index: {}]  }
   0x1   :  { %v4_v0 = vld [vmem:[%s61_s0] sm:$0x3]  ;;  %s33_s0 = smov 127  }
   0x2   :  { %5 = vst [vmem:[#allocation0] sm:$0x3] %v4_v0 }
   0x9   :  { %v9_v1 = vld [vmem:[#allocation0] sm:$0x3]  }
   0xa   :  { %v21_v2 = vld [vmem:[#allocation0] sm:$0x3]   ;;  %10 = vrot.lane.b32.xlu0 %v9_v1, %s33_s0 }
   0xb   :  { %22 = vrot.lane.b32.xlu1 %v21_v2, %s34_s8  ;;  %v6_v3 = vld [vmem:[#allocation0] sm:$0x3]  }
   0xc   :  { %v15_v4 = vld [vmem:[#allocation0] sm:$0x3]   ;;  %8 = vst.msk [vmem:[%s62_s1] ss:$4 sm:$0x3] %vm7_vm0, %v6_v3  }
   0xe   :  { %16 = vrot.lane.b32.xlu0 %v15_v4, %s35_s11 }
  0x7c   :  { %v11_v5 = vpop.permute.xlu0 %10  }
  0x7d   :  { %v23_v6 = vpop.permute.xlu1 %22   ;;  %27 = vst.msk [vmem:[%s62_s1 + $0x1] ss:$4 sm:$0x3] %vm7_vm0, %v11_v5  }
  0x7e   :  { %29 = vst.msk [vmem:[%s62_s1 + $0x3] ss:$4 sm:$0x3] %vm7_vm0, %v23_v6  }
  0x80   :  { %v17_v7 = vpop.permute.xlu0 %16  }
  0x81   :  { %28 = vst.msk [vmem:[%s62_s1 + $0x2] ss:$4 sm:$0x3] %vm7_vm0, %v17_v7  }

// kernel: _bn_model_forward_impl.1
= control target key start
LH: loop header
LB: loop body
LE: loop exit
PB: predicated region body
PF: predicated region fallthrough
CT: control target
= control target key end

     0   :  { %vm24_vm0 = vcmask 7168   ;;  %s76_s16 = smov 1   ;;  %v77_v18 = vmov 0   ;;  %s117_s0 = inlined_call_operand.vmem [shape: f32[8,256], index: 0, kind: input, shape index: {}]   ;;  %s118_s1 = inlined_call_operand.vmem [shape: f32[8,1], index: 1, kind: input, shape index: {}]   ;;  %s119_s2 = inlined_call_operand.vmem [shape: f32[8,1], index: 2, kind: input, shape index: {}]   ;;  %s120_s3 = inlined_call_operand.vmem [shape: f32[8,256], index: 3, kind: output, shape index: {}]  }
   0x1   :  { %v14_v0 = vld [vmem:[%s117_s0] sm:$0xff]  ;;  %v15_v1 = vld [vmem:[%s117_s0 + $0x8] sm:$0xff]  ;;  %72 = vset.pattern.permute.xlu0 %v77_v18  ;;  %73 = vset.pattern.permute.xlu1 %v77_v18  ;;  %s78_s0 = smov 127  }
   0x2   :  { %v16_v2 = vadd.f32 %v15_v1, %v14_v0  ;;  %v19_v3 = vmul.f32 %v14_v0, %v14_v0  ;;  %v20_v4 = vmul.f32 %v15_v1, %v15_v1  ;;  %v39_v20 = vld [vmem:[%s118_s1] sm:$0xff] }
   0x3   :  { %v40_v21 = vmul.f32 2.0, %v39_v20  ;;  %v46_v24 = vld [vmem:[%s119_s2] sm:$0xff] }
   0x4   :  { %17 = vadd.xlane.f32.xlu0 %v16_v2  ;;  %v21_v5 = vadd.f32 %v20_v4, %v19_v3 }
   0x8   :  { %22 = vadd.xlane.f32.xlu0 %v21_v5 }
  0x91   :  { %v18_v6 = vpop.xlane.xlu0 %17 }
  0x95   :  { %v23_v7 = vpop.xlane.xlu0 %22 }
  0x96   :  { %v25_v8 = vsel %vm24_vm0, %v18_v6, %v23_v7 }
  0x97   :  { %v26_v9 = vrot.slane %v25_v8, 4 }
  0x99   :  { %v27_v10 = vadd.f32 %v26_v9, %v25_v8 }
  0x9b   :  { %v28_v11 = vmul.f32 0.001953125, %v27_v10 }
  0x9d   :  { %v29_v12 = vmul.f32 %v28_v11, %v28_v11 }
  0x9f   :  { %31 = vrot.lane.b32.xlu1 %v29_v12, %s76_s16 }
 0x111   :  { %v32_v13 = vpop.permute.xlu1 %31 }
 0x112   :  { %v34_v14 = vsub.f32 %v28_v11, %v32_v13 }
 0x114   :  { %v35_v15 = vmax.f32 %v34_v14, 0.0 }
 0x116   :  { %v36_v16 = vmul.f32 4.0, %v35_v15 }
 0x118   :  { %v37_v17 = vadd.f32 1e-05, %v36_v16 }
 0x11a   :  { %74 = vrsqrt.f32 %v37_v17 }
 0x124   :  { %v75_v19 = vpop.eup %74 }
 0x125   :  { %42 = vrot.lane.b32.xlu1 %v75_v19, %s78_s0 }
 0x197   :  { %v43_v22 = vpop.permute.xlu1 %42 }
 0x198   :  { %v45_v23 = vmul.f32 %v43_v22, %v40_v21 }
 0x19a   :  { %v47_v25 = vmul.f32 %v45_v23, %v28_v11  ;;  %51 = vperm.xlu0 %72, %v45_v23  }
 0x19c   :  { %v48_v26 = vsub.f32 %v46_v24, %v47_v25 }
 0x19e   :  { %58 = vperm.xlu1 %73, %v48_v26  }
 0x219   :  { %v52_v27 = vpop.permute.xlu0 %51 }
 0x21a   :  { %v54_v28 = vmul.f32 %v52_v27, %v14_v0  ;;  %v55_v29 = vmul.f32 %v52_v27, %v15_v1 }
 0x21d   :  { %v59_v30 = vpop.permute.xlu1 %58 }
 0x21e   :  { %v61_v31 = vadd.f32 %v59_v30, %v54_v28  ;;  %v62_v32 = vadd.f32 %v59_v30, %v55_v29 }
 0x220   :  { %63 = vst [vmem:[%s120_s3] sm:$0xff] %v61_v31  ;;  %64 = vst [vmem:[%s120_s3 + $0x8] sm:$0xff] %v62_v32 }

</bundles_post_ra>
